<compile_context>
chip_gen: v7x
topology: tpu7x:2x2x1
jax: 0.10.0
libtpu: 0.0.40
codegen_flags: <defaults>
</compile_context>

<pallas_src>
import numpy as np
import jax
import jax.numpy as jnp
from jax.experimental import pallas as pl
from jax.experimental.pallas import tpu as pltpu

# ---------------- model hyper-parameters ------------------------------------
CHW = (3, 16, 16)                      # (c, h, w)
N_PATCHES = 4
PATCH = CHW[1] // N_PATCHES            # 4
INPUT_D = CHW[0] * PATCH * PATCH       # 48
AUG = 56                               # 1 + INPUT_D padded up to a multiple of 8
D = 32                                 # token hidden dim
HEAD = 2                               # MHA_ hard-codes two heads (_1 / _2)
DH = D // HEAD                         # 16
N_TOK = N_PATCHES ** 2 + 1             # 17 tokens (class token + 16 patches)
MLP_HIDDEN = 64
NUM_CLASSES = 10
LN_EPS = 1e-5
OUT_W = 128                            # lane-dense output width
F32 = jnp.float32

# ---------------- parameter-slab row offsets (all multiples of 8) ------------
OFF_WMAP = 0                  # (AUG, D)        mapper^T, class token in row 0
OFF_POS = OFF_WMAP + AUG      # (N_TOK, D)      positional embedding     -> 56
OFF_LN = 80                   # (8, D)          rows: g1, b1, g2, b2, pad
OFF_WQ = 88                   # (D, D)          block-diagonal Wq^T
OFF_WK = 120                  # (D, D)
OFF_WV = 152                  # (D, D)
OFF_FC1 = 184                 # (D, MLP_HIDDEN)
OFF_FC2 = 216                 # (MLP_HIDDEN, D)
OFF_CLS = 280                 # (D, OUT_W)      classifier^T, cols>=10 are zero
SLAB_ROWS = 312


# ---------------- plain-JAX glue ---------------------------------------------
def patchify_jax(images, n_patches):
    """Matches the PyTorch patchify(): per-patch flatten order is (c, ph, pw)."""
    n, c, h, w = images.shape
    ps = h // n_patches
    x = images.reshape(n, c, n_patches, ps, n_patches, ps)
    x = jnp.transpose(x, (0, 2, 4, 1, 3, 5))          # n, gi, gj, c, ph, pw
    return x.reshape(n, n_patches * n_patches, c * ps * ps)


def get_positional_embeddings_np(seq_len, d):
    """Identical to the PyTorch helper (sin on even cols, cos on odd cols)."""
    result = np.ones((seq_len, d), dtype=np.float32)
    for i in range(seq_len):
        for j in range(d):
            if j % 2 == 0:
                result[i, j] = np.sin(i / 10000 ** (j / d))
            else:
                result[i, j] = np.cos(i / 10000 ** ((j - 1) / d))
    return result


# ---------------- in-kernel helpers ------------------------------------------
def _mm(a, b):
    """a @ b, f32 accumulate, default (single-pass) MXU precision."""
    return jax.lax.dot_general(a, b, (((1,), (0,)), ((), ())),
                               preferred_element_type=F32)


def _mm_nt(a, b):
    """a @ b.T, f32 accumulate, default (single-pass) MXU precision."""
    return jax.lax.dot_general(a, b, (((1,), (1,)), ((), ())),
                               preferred_element_type=F32)


def _layernorm(x, g, b):
    mu = jnp.mean(x, axis=-1, keepdims=True)
    var = jnp.mean((x - mu) ** 2, axis=-1, keepdims=True)
    return (x - mu) * jax.lax.rsqrt(var + LN_EPS) * g + b


def _erf(x):
    # Abramowitz & Stegun 7.1.26 (|err| < 1.5e-7 ~ f32 resolution).
    a1, a2, a3, a4, a5 = (0.254829592, -0.284496736, 1.421413741,
                          -1.453152027, 1.061405429)
    p = 0.3275911
    ax = jnp.abs(x)
    t = 1.0 / (1.0 + p * ax)
    poly = ((((a5 * t + a4) * t + a3) * t + a2) * t + a1) * t
    y = 1.0 - poly * jnp.exp(-ax * ax)
    return jnp.where(x >= 0.0, y, -y)


def _gelu_exact(x):
    return 0.5 * x * (1.0 + _erf(x * 0.7071067811865476))


# ---------------- Pallas kernel ----------------------------------------------
def vit_kernel(p_ref, w_ref, o_ref):
    # per-image augmented patch matrix (row 0 one-hot selects the class token)
    xp = p_ref[...]                                        # (N_TOK, AUG)

    wmapT = w_ref[OFF_WMAP:OFF_WMAP + AUG, 0:D]            # (AUG, D)
    pos = w_ref[OFF_POS:OFF_POS + N_TOK, 0:D]              # (N_TOK, D)
    ln = w_ref[OFF_LN:OFF_LN + 8, 0:D]                     # (8, D)
    g1, b1, g2, b2 = ln[0:1], ln[1:2], ln[2:3], ln[3:4]

    # patch embedding + class token + positional embedding
    x0 = _mm(xp, wmapT) + pos                              # (N_TOK, D)

    # ---- ViT_one_layer -------------------------------------------------------
    xl = _layernorm(x0, g1, b1)                            # ln1_1

    wq = w_ref[OFF_WQ:OFF_WQ + D, 0:D]                     # block-diagonal
    wk = w_ref[OFF_WK:OFF_WK + D, 0:D]
    wv = w_ref[OFF_WV:OFF_WV + D, 0:D]
    q = _mm(xl, wq)                                        # heads live in lanes
    k = _mm(xl, wk)
    v = _mm(xl, wv)

    # MHA_: per-head Sc = Q K^T (no softmax / no scaling, as in the reference),
    # out = Sc V; head separation + concat via cheap VPU lane masks.
    hcol = jax.lax.broadcasted_iota(jnp.int32, (N_TOK, D), 1)
    m1 = jnp.where(hcol < DH, 1.0, 0.0).astype(F32)
    m2 = 1.0 - m1
    q1, k1, v1 = q * m1, k * m1, v * m1
    q2, k2, v2 = q * m2, k * m2, v * m2
    sc1 = _mm_nt(q1, k1)                                   # (N_TOK, N_TOK)
    sc2 = _mm_nt(q2, k2)
    mha = _mm(sc1, v1) + _mm(sc2, v2)                      # head concat for free

    id2 = mha + xl                                         # residual 1
    y = _layernorm(id2, g2, b2)                            # ln1_2
    wf1 = w_ref[OFF_FC1:OFF_FC1 + D, 0:MLP_HIDDEN]
    wf2 = w_ref[OFF_FC2:OFF_FC2 + MLP_HIDDEN, 0:D]
    h = _gelu_exact(_mm(y, wf1))                           # fc1 + GELU
    z = _mm(h, wf2)                                        # fc2
    blk = z + id2                                          # residual 2

    # ---- classification head (class-token row) + softmax ---------------------
    cls = blk[0:1, :]                                      # (1, D)
    wcls = w_ref[OFF_CLS:OFF_CLS + D, :]                   # (D, OUT_W)
    logits = _mm(cls, wcls)                                # (1, OUT_W)
    ccol = jax.lax.broadcasted_iota(jnp.int32, (1, OUT_W), 1)
    logits = jnp.where(ccol < NUM_CLASSES, logits, -1e30)  # pad lanes -> -inf
    m = jnp.max(logits, axis=-1, keepdims=True)
    e = jnp.exp(logits - m)
    o_ref[...] = e / jnp.sum(e, axis=-1, keepdims=True)    # softmax(dim=-1)


# ---------------- wrapper -----------------------------------------------------
def vit_forward_pallas(images, slab):
    B = images.shape[0]
    patches = patchify_jax(images, N_PATCHES)              # (B, 16, INPUT_D)

    # augmented patch matrix: row 0 selects the class-token column of wmapT
    p_aug = jnp.zeros((B, N_TOK, AUG), F32)
    p_aug = p_aug.at[:, 0, 0].set(1.0)
    p_aug = p_aug.at[:, 1:, 1:1 + INPUT_D].set(patches)

    out = pl.pallas_call(
        vit_kernel,
        out_shape=jax.ShapeDtypeStruct((B, 1, OUT_W), F32),
        grid=(B,),
        in_specs=[
            pl.BlockSpec((None, N_TOK, AUG), lambda b: (b, 0, 0)),
            pl.BlockSpec((SLAB_ROWS, 128), lambda b: (0, 0)),   # resident slab
        ],
        out_specs=pl.BlockSpec((None, 1, OUT_W), lambda b: (b, 0, 0)),
        compiler_params=pltpu.CompilerParams(
            dimension_semantics=("parallel",)),
    )(p_aug, slab)
    return out[:, 0, :NUM_CLASSES]                          # (B, NUM_CLASSES)


# ---------------- pure-JAX reference (sanity check) ---------------------------
def vit_forward_ref(images, base):
    patches = patchify_jax(images, N_PATCHES)               # (B, 16, INPUT_D)

    def one(p):
        tokens = p @ base['wmap'].T
        tokens = jnp.concatenate([base['cls'], tokens], axis=0)
        x = tokens + base['pos']

        def ln(v, g, b):
            mu = v.mean(-1, keepdims=True)
            var = ((v - mu) ** 2).mean(-1, keepdims=True)
            return (v - mu) / jnp.sqrt(var + LN_EPS) * g + b

        xl = ln(x, base['g1'], base['b1'])
        x1, x2 = xl[:, :DH], xl[:, DH:]
        q1, k1, v1 = x1 @ base['wq1'].T, x1 @ base['wk1'].T, x1 @ base['wv1'].T
        q2, k2, v2 = x2 @ base['wq2'].T, x2 @ base['wk2'].T, x2 @ base['wv2'].T
        mha = jnp.concatenate([(q1 @ k1.T) @ v1, (q2 @ k2.T) @ v2], axis=1)
        id2 = mha + xl
        y = ln(id2, base['g2'], base['b2'])
        h = y @ base['wfc1'].T
        h = 0.5 * h * (1.0 + jax.scipy.special.erf(h / jnp.sqrt(2.0)))
        z = h @ base['wfc2'].T
        blk = z + id2
        logits = blk[0:1] @ base['wcls'].T
        return jax.nn.softmax(logits, axis=-1)[0]

    return jax.vmap(one)(patches)


# ---------------- deterministic parameter construction ------------------------
def make_params(key):
    ks = jax.random.split(key, 12)
    nrm = lambda k, shp: (0.02 * jax.random.normal(k, shp)).astype(F32)
    base = dict(
        wmap=nrm(ks[0], (D, INPUT_D)),
        cls=jax.random.uniform(ks[1], (1, D), dtype=F32),     # torch.rand
        pos=jnp.asarray(get_positional_embeddings_np(N_TOK, D)),
        g1=jnp.ones((1, D), F32), b1=jnp.zeros((1, D), F32),
        g2=jnp.ones((1, D), F32), b2=jnp.zeros((1, D), F32),
        wq1=nrm(ks[2], (DH, DH)), wk1=nrm(ks[3], (DH, DH)), wv1=nrm(ks[4], (DH, DH)),
        wq2=nrm(ks[5], (DH, DH)), wk2=nrm(ks[6], (DH, DH)), wv2=nrm(ks[7], (DH, DH)),
        wfc1=nrm(ks[8], (MLP_HIDDEN, D)),
        wfc2=nrm(ks[9], (D, MLP_HIDDEN)),
        wcls=nrm(ks[10], (NUM_CLASSES, D)),
    )

    def blockdiag_T(w1, w2):
        # pre-transposed block-diagonal weight: x @ W == concat(x1@w1.T, x2@w2.T)
        bd = np.zeros((D, D), np.float32)
        bd[:DH, :DH] = np.asarray(w1).T
        bd[DH:, DH:] = np.asarray(w2).T
        return bd

    slab = np.zeros((SLAB_ROWS, 128), np.float32)
    # patch mapper^T with class token folded in as row 0 (rows 49..55 stay zero)
    slab[OFF_WMAP, :D] = np.asarray(base['cls'][0])
    slab[OFF_WMAP + 1:OFF_WMAP + 1 + INPUT_D, :D] = np.asarray(base['wmap']).T
    slab[OFF_POS:OFF_POS + N_TOK, :D] = np.asarray(base['pos'])
    slab[OFF_LN + 0, :D] = np.asarray(base['g1'][0])
    slab[OFF_LN + 1, :D] = np.asarray(base['b1'][0])
    slab[OFF_LN + 2, :D] = np.asarray(base['g2'][0])
    slab[OFF_LN + 3, :D] = np.asarray(base['b2'][0])
    slab[OFF_WQ:OFF_WQ + D, :D] = blockdiag_T(base['wq1'], base['wq2'])
    slab[OFF_WK:OFF_WK + D, :D] = blockdiag_T(base['wk1'], base['wk2'])
    slab[OFF_WV:OFF_WV + D, :D] = blockdiag_T(base['wv1'], base['wv2'])
    slab[OFF_FC1:OFF_FC1 + D, :MLP_HIDDEN] = np.asarray(base['wfc1']).T
    slab[OFF_FC2:OFF_FC2 + MLP_HIDDEN, :D] = np.asarray(base['wfc2']).T
    slab[OFF_CLS:OFF_CLS + D, :NUM_CLASSES] = np.asarray(base['wcls']).T
    return base, jnp.asarray(slab)


# ---------------- main --------------------------------------------------------
if __name__ == "__main__":
    key = jax.random.PRNGKey(0)
    pkey, xkey = jax.random.split(key)
    base, slab = make_params(pkey)

    B = 8
    images = jax.random.normal(xkey, (B,) + CHW, dtype=F32)   # NCHW batch

    out = jax.block_until_ready(vit_forward_pallas(images, slab))
    ref = jax.block_until_ready(vit_forward_ref(images, base))

    o = np.asarray(out)
    r = np.asarray(ref)
    assert out.shape == (B, NUM_CLASSES)
    assert np.isfinite(o).all()
    assert np.allclose(o, r, atol=1e-3, rtol=1e-2), float(np.abs(o - r).max())
    assert np.allclose(o.sum(axis=-1), 1.0, atol=1e-4)        # softmax rows sum to 1

    print("KERNEL_OK")
</pallas_src>

<mosaic_0001>
module attributes {stable_mosaic.version = 11 : i64} {
  func.func @vit_kernel(%arg0: i32, %arg1: memref<1x17x56xf32, #tpu.memory_space<vmem>>, %arg2: memref<312x128xf32, #tpu.memory_space<vmem>>, %arg3: memref<1x1x128xf32, #tpu.memory_space<vmem>>) attributes {dimension_semantics = [#tpu.dimension_semantics<parallel>], iteration_bounds = array<i64: 8>, scalar_prefetch = 0 : i64, scratch_operands = 0 : i64, tpu.core_type = #tpu.core_type<tc>, window_params = [{transform_indices = @transform_0, window_bounds = array<i64: 1, 17, 56>}, {pipeline_mode = #tpu.pipeline_mode<synchronous>, transform_indices = @transform_1, window_bounds = array<i64: 312, 128>}, {transform_indices = @transform_2, window_bounds = array<i64: 1, 1, 128>}]} {
    %c0 = arith.constant 0 : index
    %c0_0 = arith.constant 0 : index
    %c0_1 = arith.constant 0 : index
    %0 = vector.load %arg1[%c0, %c0_0, %c0_1] : memref<1x17x56xf32, #tpu.memory_space<vmem>>, vector<1x17x56xf32>
    %1 = vector.shape_cast %0 : vector<1x17x56xf32> to vector<17x56xf32>
    %c0_2 = arith.constant 0 : index
    %c0_3 = arith.constant 0 : index
    %2 = vector.load %arg2[%c0_2, %c0_3] : memref<312x128xf32, #tpu.memory_space<vmem>>, vector<56x32xf32>
    %c56 = arith.constant 56 : index
    %c0_4 = arith.constant 0 : index
    %3 = vector.load %arg2[%c56, %c0_4] : memref<312x128xf32, #tpu.memory_space<vmem>>, vector<17x32xf32>
    %c80 = arith.constant 80 : index
    %c0_5 = arith.constant 0 : index
    %4 = vector.load %arg2[%c80, %c0_5] : memref<312x128xf32, #tpu.memory_space<vmem>>, vector<8x32xf32>
    %5 = vector.extract_strided_slice %4 {offsets = [0, 0], sizes = [1, 32], strides = [1, 1]} : vector<8x32xf32> to vector<1x32xf32>
    %6 = vector.extract_strided_slice %4 {offsets = [1, 0], sizes = [1, 32], strides = [1, 1]} : vector<8x32xf32> to vector<1x32xf32>
    %7 = vector.extract_strided_slice %4 {offsets = [2, 0], sizes = [1, 32], strides = [1, 1]} : vector<8x32xf32> to vector<1x32xf32>
    %8 = vector.extract_strided_slice %4 {offsets = [3, 0], sizes = [1, 32], strides = [1, 1]} : vector<8x32xf32> to vector<1x32xf32>
    %cst = arith.constant dense<0.000000e+00> : vector<17x32xf32>
    %9 = tpu.matmul %1, %2, %cst {dimension_numbers = #tpu.dot_dimension_numbers<[1], [0], [0], [1], [0, 0, 1, 1], [], []>} : vector<17x56xf32>, vector<56x32xf32>, vector<17x32xf32> -> vector<17x32xf32>
    %10 = arith.addf %9, %3 : vector<17x32xf32>
    %cst_6 = arith.constant dense<0.000000e+00> : vector<17xf32>
    %11 = vector.multi_reduction <add>, %10, %cst_6 [1] : vector<17x32xf32> to vector<17xf32>
    %12 = vector.shape_cast %11 : vector<17xf32> to vector<17x1xf32>
    %cst_7 = arith.constant 3.200000e+01 : f32
    %13 = vector.broadcast %cst_7 : f32 to vector<17x1xf32>
    %14 = arith.divf %12, %13 : vector<17x1xf32>
    %15 = vector.broadcast %14 : vector<17x1xf32> to vector<17x32xf32>
    %16 = arith.subf %10, %15 : vector<17x32xf32>
    %17 = arith.mulf %16, %16 : vector<17x32xf32>
    %cst_8 = arith.constant dense<0.000000e+00> : vector<17xf32>
    %18 = vector.multi_reduction <add>, %17, %cst_8 [1] : vector<17x32xf32> to vector<17xf32>
    %19 = vector.shape_cast %18 : vector<17xf32> to vector<17x1xf32>
    %cst_9 = arith.constant 3.200000e+01 : f32
    %20 = vector.broadcast %cst_9 : f32 to vector<17x1xf32>
    %21 = arith.divf %19, %20 : vector<17x1xf32>
    %22 = vector.broadcast %14 : vector<17x1xf32> to vector<17x32xf32>
    %23 = arith.subf %10, %22 : vector<17x32xf32>
    %cst_10 = arith.constant 9.99999974E-6 : f32
    %24 = vector.broadcast %cst_10 : f32 to vector<17x1xf32>
    %25 = arith.addf %21, %24 : vector<17x1xf32>
    %26 = math.rsqrt %25 : vector<17x1xf32>
    %27 = vector.broadcast %26 : vector<17x1xf32> to vector<17x32xf32>
    %28 = arith.mulf %23, %27 : vector<17x32xf32>
    %29 = vector.broadcast %5 : vector<1x32xf32> to vector<17x32xf32>
    %30 = arith.mulf %28, %29 : vector<17x32xf32>
    %31 = vector.broadcast %6 : vector<1x32xf32> to vector<17x32xf32>
    %32 = arith.addf %30, %31 : vector<17x32xf32>
    %c88 = arith.constant 88 : index
    %c0_11 = arith.constant 0 : index
    %33 = vector.load %arg2[%c88, %c0_11] : memref<312x128xf32, #tpu.memory_space<vmem>>, vector<32x32xf32>
    %c120 = arith.constant 120 : index
    %c0_12 = arith.constant 0 : index
    %34 = vector.load %arg2[%c120, %c0_12] : memref<312x128xf32, #tpu.memory_space<vmem>>, vector<32x32xf32>
    %c152 = arith.constant 152 : index
    %c0_13 = arith.constant 0 : index
    %35 = vector.load %arg2[%c152, %c0_13] : memref<312x128xf32, #tpu.memory_space<vmem>>, vector<32x32xf32>
    %cst_14 = arith.constant dense<0.000000e+00> : vector<17x32xf32>
    %36 = tpu.matmul %32, %33, %cst_14 {dimension_numbers = #tpu.dot_dimension_numbers<[1], [0], [0], [1], [0, 0, 1, 1], [], []>} : vector<17x32xf32>, vector<32x32xf32>, vector<17x32xf32> -> vector<17x32xf32>
    %cst_15 = arith.constant dense<0.000000e+00> : vector<17x32xf32>
    %37 = tpu.matmul %32, %34, %cst_15 {dimension_numbers = #tpu.dot_dimension_numbers<[1], [0], [0], [1], [0, 0, 1, 1], [], []>} : vector<17x32xf32>, vector<32x32xf32>, vector<17x32xf32> -> vector<17x32xf32>
    %cst_16 = arith.constant dense<0.000000e+00> : vector<17x32xf32>
    %38 = tpu.matmul %32, %35, %cst_16 {dimension_numbers = #tpu.dot_dimension_numbers<[1], [0], [0], [1], [0, 0, 1, 1], [], []>} : vector<17x32xf32>, vector<32x32xf32>, vector<17x32xf32> -> vector<17x32xf32>
    %39 = tpu.iota {dimensions = array<i32: 1>} : vector<17x32xi32>
    %c16_i32 = arith.constant 16 : i32
    %40 = vector.broadcast %c16_i32 : i32 to vector<17x32xi32>
    %41 = arith.cmpi slt, %39, %40 : vector<17x32xi32>
    %cst_17 = arith.constant 1.000000e+00 : f32
    %cst_18 = arith.constant 0.000000e+00 : f32
    %42 = vector.broadcast %cst_17 : f32 to vector<17x32xf32>
    %43 = vector.broadcast %cst_18 : f32 to vector<17x32xf32>
    %44 = arith.select %41, %42, %43 : vector<17x32xi1>, vector<17x32xf32>
    %cst_19 = arith.constant 1.000000e+00 : f32
    %45 = vector.broadcast %cst_19 : f32 to vector<17x32xf32>
    %46 = arith.subf %45, %44 : vector<17x32xf32>
    %47 = arith.mulf %36, %44 : vector<17x32xf32>
    %48 = arith.mulf %37, %44 : vector<17x32xf32>
    %49 = arith.mulf %38, %44 : vector<17x32xf32>
    %50 = arith.mulf %36, %46 : vector<17x32xf32>
    %51 = arith.mulf %37, %46 : vector<17x32xf32>
    %52 = arith.mulf %38, %46 : vector<17x32xf32>
    %cst_20 = arith.constant dense<0.000000e+00> : vector<17x17xf32>
    %53 = tpu.matmul %47, %48, %cst_20 {dimension_numbers = #tpu.dot_dimension_numbers<[1], [1], [0], [0], [0, 0, 1, 0], [], []>} : vector<17x32xf32>, vector<17x32xf32>, vector<17x17xf32> -> vector<17x17xf32>
    %cst_21 = arith.constant dense<0.000000e+00> : vector<17x17xf32>
    %54 = tpu.matmul %50, %51, %cst_21 {dimension_numbers = #tpu.dot_dimension_numbers<[1], [1], [0], [0], [0, 0, 1, 0], [], []>} : vector<17x32xf32>, vector<17x32xf32>, vector<17x17xf32> -> vector<17x17xf32>
    %cst_22 = arith.constant dense<0.000000e+00> : vector<17x32xf32>
    %55 = tpu.matmul %53, %49, %cst_22 {dimension_numbers = #tpu.dot_dimension_numbers<[1], [0], [0], [1], [0, 0, 1, 1], [], []>} : vector<17x17xf32>, vector<17x32xf32>, vector<17x32xf32> -> vector<17x32xf32>
    %cst_23 = arith.constant dense<0.000000e+00> : vector<17x32xf32>
    %56 = tpu.matmul %54, %52, %cst_23 {dimension_numbers = #tpu.dot_dimension_numbers<[1], [0], [0], [1], [0, 0, 1, 1], [], []>} : vector<17x17xf32>, vector<17x32xf32>, vector<17x32xf32> -> vector<17x32xf32>
    %57 = arith.addf %55, %56 : vector<17x32xf32>
    %58 = arith.addf %57, %32 : vector<17x32xf32>
    %cst_24 = arith.constant dense<0.000000e+00> : vector<17xf32>
    %59 = vector.multi_reduction <add>, %58, %cst_24 [1] : vector<17x32xf32> to vector<17xf32>
    %60 = vector.shape_cast %59 : vector<17xf32> to vector<17x1xf32>
    %cst_25 = arith.constant 3.200000e+01 : f32
    %61 = vector.broadcast %cst_25 : f32 to vector<17x1xf32>
    %62 = arith.divf %60, %61 : vector<17x1xf32>
    %63 = vector.broadcast %62 : vector<17x1xf32> to vector<17x32xf32>
    %64 = arith.subf %58, %63 : vector<17x32xf32>
    %65 = arith.mulf %64, %64 : vector<17x32xf32>
    %cst_26 = arith.constant dense<0.000000e+00> : vector<17xf32>
    %66 = vector.multi_reduction <add>, %65, %cst_26 [1] : vector<17x32xf32> to vector<17xf32>
    %67 = vector.shape_cast %66 : vector<17xf32> to vector<17x1xf32>
    %cst_27 = arith.constant 3.200000e+01 : f32
    %68 = vector.broadcast %cst_27 : f32 to vector<17x1xf32>
    %69 = arith.divf %67, %68 : vector<17x1xf32>
    %70 = vector.broadcast %62 : vector<17x1xf32> to vector<17x32xf32>
    %71 = arith.subf %58, %70 : vector<17x32xf32>
    %cst_28 = arith.constant 9.99999974E-6 : f32
    %72 = vector.broadcast %cst_28 : f32 to vector<17x1xf32>
    %73 = arith.addf %69, %72 : vector<17x1xf32>
    %74 = math.rsqrt %73 : vector<17x1xf32>
    %75 = vector.broadcast %74 : vector<17x1xf32> to vector<17x32xf32>
    %76 = arith.mulf %71, %75 : vector<17x32xf32>
    %77 = vector.broadcast %7 : vector<1x32xf32> to vector<17x32xf32>
    %78 = arith.mulf %76, %77 : vector<17x32xf32>
    %79 = vector.broadcast %8 : vector<1x32xf32> to vector<17x32xf32>
    %80 = arith.addf %78, %79 : vector<17x32xf32>
    %c184 = arith.constant 184 : index
    %c0_29 = arith.constant 0 : index
    %81 = vector.load %arg2[%c184, %c0_29] : memref<312x128xf32, #tpu.memory_space<vmem>>, vector<32x64xf32>
    %c216 = arith.constant 216 : index
    %c0_30 = arith.constant 0 : index
    %82 = vector.load %arg2[%c216, %c0_30] : memref<312x128xf32, #tpu.memory_space<vmem>>, vector<64x32xf32>
    %cst_31 = arith.constant dense<0.000000e+00> : vector<17x64xf32>
    %83 = tpu.matmul %80, %81, %cst_31 {dimension_numbers = #tpu.dot_dimension_numbers<[1], [0], [0], [1], [0, 0, 1, 1], [], []>} : vector<17x32xf32>, vector<32x64xf32>, vector<17x64xf32> -> vector<17x64xf32>
    %cst_32 = arith.constant 5.000000e-01 : f32
    %84 = vector.broadcast %cst_32 : f32 to vector<17x64xf32>
    %85 = arith.mulf %84, %83 : vector<17x64xf32>
    %cst_33 = arith.constant 0.707106769 : f32
    %86 = vector.broadcast %cst_33 : f32 to vector<17x64xf32>
    %87 = arith.mulf %83, %86 : vector<17x64xf32>
    %88 = math.absf %87 : vector<17x64xf32>
    %cst_34 = arith.constant 0.327591091 : f32
    %89 = vector.broadcast %cst_34 : f32 to vector<17x64xf32>
    %90 = arith.mulf %89, %88 : vector<17x64xf32>
    %cst_35 = arith.constant 1.000000e+00 : f32
    %91 = vector.broadcast %cst_35 : f32 to vector<17x64xf32>
    %92 = arith.addf %91, %90 : vector<17x64xf32>
    %cst_36 = arith.constant 1.000000e+00 : f32
    %93 = vector.broadcast %cst_36 : f32 to vector<17x64xf32>
    %94 = arith.divf %93, %92 : vector<17x64xf32>
    %cst_37 = arith.constant 1.06140542 : f32
    %95 = vector.broadcast %cst_37 : f32 to vector<17x64xf32>
    %96 = arith.mulf %95, %94 : vector<17x64xf32>
    %cst_38 = arith.constant -1.45315206 : f32
    %97 = vector.broadcast %cst_38 : f32 to vector<17x64xf32>
    %98 = arith.addf %96, %97 : vector<17x64xf32>
    %99 = arith.mulf %98, %94 : vector<17x64xf32>
    %cst_39 = arith.constant 1.42141378 : f32
    %100 = vector.broadcast %cst_39 : f32 to vector<17x64xf32>
    %101 = arith.addf %99, %100 : vector<17x64xf32>
    %102 = arith.mulf %101, %94 : vector<17x64xf32>
    %cst_40 = arith.constant -0.284496725 : f32
    %103 = vector.broadcast %cst_40 : f32 to vector<17x64xf32>
    %104 = arith.addf %102, %103 : vector<17x64xf32>
    %105 = arith.mulf %104, %94 : vector<17x64xf32>
    %cst_41 = arith.constant 0.254829586 : f32
    %106 = vector.broadcast %cst_41 : f32 to vector<17x64xf32>
    %107 = arith.addf %105, %106 : vector<17x64xf32>
    %108 = arith.mulf %107, %94 : vector<17x64xf32>
    %cst_42 = arith.constant 0.000000e+00 : f32
    %109 = vector.broadcast %cst_42 : f32 to vector<17x64xf32>
    %110 = arith.subf %109, %88 : vector<17x64xf32>
    %111 = arith.mulf %110, %88 : vector<17x64xf32>
    %112 = math.exp %111 : vector<17x64xf32>
    %113 = arith.mulf %108, %112 : vector<17x64xf32>
    %cst_43 = arith.constant 1.000000e+00 : f32
    %114 = vector.broadcast %cst_43 : f32 to vector<17x64xf32>
    %115 = arith.subf %114, %113 : vector<17x64xf32>
    %cst_44 = arith.constant 0.000000e+00 : f32
    %116 = vector.broadcast %cst_44 : f32 to vector<17x64xf32>
    %117 = arith.cmpf oge, %87, %116 : vector<17x64xf32>
    %cst_45 = arith.constant 0.000000e+00 : f32
    %118 = vector.broadcast %cst_45 : f32 to vector<17x64xf32>
    %119 = arith.subf %118, %115 : vector<17x64xf32>
    %120 = arith.select %117, %115, %119 : vector<17x64xi1>, vector<17x64xf32>
    %cst_46 = arith.constant 1.000000e+00 : f32
    %121 = vector.broadcast %cst_46 : f32 to vector<17x64xf32>
    %122 = arith.addf %121, %120 : vector<17x64xf32>
    %123 = arith.mulf %85, %122 : vector<17x64xf32>
    %cst_47 = arith.constant dense<0.000000e+00> : vector<17x32xf32>
    %124 = tpu.matmul %123, %82, %cst_47 {dimension_numbers = #tpu.dot_dimension_numbers<[1], [0], [0], [1], [0, 0, 1, 1], [], []>} : vector<17x64xf32>, vector<64x32xf32>, vector<17x32xf32> -> vector<17x32xf32>
    %125 = arith.addf %124, %58 : vector<17x32xf32>
    %126 = vector.extract_strided_slice %125 {offsets = [0, 0], sizes = [1, 32], strides = [1, 1]} : vector<17x32xf32> to vector<1x32xf32>
    %c280 = arith.constant 280 : index
    %c0_48 = arith.constant 0 : index
    %127 = vector.load %arg2[%c280, %c0_48] : memref<312x128xf32, #tpu.memory_space<vmem>>, vector<32x128xf32>
    %cst_49 = arith.constant dense<0.000000e+00> : vector<1x128xf32>
    %128 = tpu.matmul %126, %127, %cst_49 {dimension_numbers = #tpu.dot_dimension_numbers<[1], [0], [0], [1], [0, 0, 1, 1], [], []>} : vector<1x32xf32>, vector<32x128xf32>, vector<1x128xf32> -> vector<1x128xf32>
    %129 = tpu.iota {dimensions = array<i32: 1>} : vector<1x128xi32>
    %c10_i32 = arith.constant 10 : i32
    %130 = vector.broadcast %c10_i32 : i32 to vector<1x128xi32>
    %131 = arith.cmpi slt, %129, %130 : vector<1x128xi32>
    %cst_50 = arith.constant -1.000000e+30 : f32
    %132 = vector.broadcast %cst_50 : f32 to vector<1x128xf32>
    %133 = arith.select %131, %128, %132 : vector<1x128xi1>, vector<1x128xf32>
    %cst_51 = arith.constant dense<0xFF800000> : vector<1xf32>
    %134 = vector.multi_reduction <maximumf>, %133, %cst_51 [1] : vector<1x128xf32> to vector<1xf32>
    %135 = vector.shape_cast %134 : vector<1xf32> to vector<1x1xf32>
    %136 = vector.broadcast %135 : vector<1x1xf32> to vector<1x128xf32>
    %137 = arith.subf %133, %136 : vector<1x128xf32>
    %138 = math.exp %137 : vector<1x128xf32>
    %cst_52 = arith.constant dense<0.000000e+00> : vector<1xf32>
    %139 = vector.multi_reduction <add>, %138, %cst_52 [1] : vector<1x128xf32> to vector<1xf32>
    %140 = vector.shape_cast %139 : vector<1xf32> to vector<1x1xf32>
    %141 = vector.broadcast %140 : vector<1x1xf32> to vector<1x128xf32>
    %142 = arith.divf %138, %141 : vector<1x128xf32>
    %c0_53 = arith.constant 0 : index
    %c0_54 = arith.constant 0 : index
    %c0_55 = arith.constant 0 : index
    %143 = vector.load %arg3[%c0_53, %c0_54, %c0_55] : memref<1x1x128xf32, #tpu.memory_space<vmem>>, vector<1x1x128xf32>
    %144 = vector.shape_cast %143 : vector<1x1x128xf32> to vector<1x128xf32>
    %145 = vector.shape_cast %142 : vector<1x128xf32> to vector<1x1x128xf32>
    tpu.vector_store %arg3[%c0_53, %c0_54, %c0_55], %145 {strides = array<i32>} : memref<1x1x128xf32, #tpu.memory_space<vmem>>, vector<1x1x128xf32>,
    return
  }
  func.func @transform_0(%arg0: i32) -> (i32, i32, i32) {
    %c0_i32 = arith.constant 0 : i32
    %c0_i32_0 = arith.constant 0 : i32
    %c0_i32_1 = arith.constant 0 : i32
    return %arg0, %c0_i32, %c0_i32_0 : i32, i32, i32
  }
  func.func @transform_1(%arg0: i32) -> (i32, i32) {
    %c0_i32 = arith.constant 0 : i32
    %c0_i32_0 = arith.constant 0 : i32
    %c0_i32_1 = arith.constant 0 : i32
    return %c0_i32, %c0_i32_0 : i32, i32
  }
  func.func @transform_2(%arg0: i32) -> (i32, i32, i32) {
    %c0_i32 = arith.constant 0 : i32
    %c0_i32_0 = arith.constant 0 : i32
    %c0_i32_1 = arith.constant 0 : i32
    return %arg0, %c0_i32, %c0_i32_0 : i32, i32, i32
  }
}

</mosaic_0001>

<bundles_post_ra>
// kernel: tpu_custom_call.1
= control target key start
LH: loop header
LB: loop body
LE: loop exit
PB: predicated region body
PF: predicated region fallthrough
CT: control target
= control target key end

     0   :  { %7 = vsyncpa [#allocation3], 0  ;;  %s2381_s0 = inlined_call_operand.vmem [shape: f32[8,17,56], index: 0, kind: input, shape index: {}]   ;;  %s2382_s1 = inlined_call_operand.vmem [shape: f32[312,128], index: 1, kind: input, shape index: {}]   ;;  %s2383_s2 = inlined_call_operand.hbm [shape: f32[8,1,128], index: 2, kind: output, shape index: {}]  }
   0x1   :  { %9 = vsyncpa [#allocation3 + $0x1], 0  ;;  %s1983_s9 = smov 0   ;;  %s1985_s10 = smov 0  }
   0x2   :  { %s1987_s11 = smov 0   ;;  %s1989_s12 = smov 0  }
   0x3 LB: > { %s2004_s13 = sadd.s32 4294967295, %s1962_s12   ;;  %s1452_s14 = sadd.s32 4294967294, %s1962_s12   ;;  %s1962_s12 = sphi %s1989_s12, %s2389_s12   ;;  %s1958_s11 = sphi %s1987_s11, %s2388_s11   ;;  %s1954_s10 = sphi %s1985_s10, %s2387_s10   ;;  %s1950_s9 = sphi %s1983_s9, %s2386_s9  }
   0x4   : > { %s2008_s15 = sadd.s32 1, %s1962_s12   ;;  %s69_s16 = sadd.s32 1, %s1958_s11 }
   0x5   : > { %s66_s17 = ssub.s32 %s1962_s12, %s2008_s15  ;;  %p79_p0 = scmp.ne.s32.totalorder %s1958_s11, %s1954_s10 }
   0x6   : > { %p67_p1 = scmp.eq.s32.totalorder %s66_s17, 0  ;;  %p80_p2 = scmp.eq.s32.totalorder %s2004_s13, 7 }
   0x7   : > { %p85_p3 = scmp.ne.s32.totalorder %s1954_s10, %s1950_s9  ;;  %p86_p4 = scmp.eq.s32.totalorder %s1452_s14, 7 }
   0x8   : > { %s2019_s18 = scalar_select %p67_p1, %s1958_s11, %s69_s16  }
   0x9   : > { %p2021_p5 = por %p80_p2, %p79_p0  ;;  %p2025_p6 = por %p86_p4, %p85_p3 }
   0xa   : > { %p1455_p7 = scmp.ge.s32.totalorder %s1962_s12, 1  ;;  %p115_p8 = scmp.lt.s32.totalorder %s1962_s12, 9 }
   0xc   : > { %p116_p9 = pnand %p1455_p7, %p115_p8 }
   0xd   : > { %v144_v0 = vld [vmem:[%s2382_s1] sm:$0xff] (!%p116_p9)  ;;  %v145_v1 = vld [vmem:[%s2382_s1 + $0x8] sm:$0xff] (!%p116_p9)  ;;  %v146_v2 = vld [vmem:[%s2382_s1 + $0x10] sm:$0xff] (!%p116_p9)  ;;  %v1964_v3 = vmov (!%p116_p9), 0.0|0.0   ;;  %vm1965_vm0 = vmmov (!%p116_p9), 0   ;;  %v1966_v6 = vmov (!%p116_p9), 0.0   ;;  %v287_v59 = vlaneseq (!%p116_p9) }
   0xe   : > { %119 = sbr.rel (%p116_p9) target bundleno = 2555 (0x9fb), region = 28  ;;  %1764 = vmatprep.subr.bf16.mxu0 (!%p116_p9), %v1964_v3  ;;  %v1765_v4 = vpack.c.bf16 (!%p116_p9), %v145_v1, %v144_v0  ;;  %v147_v5 = vld [vmem:[%s2382_s1 + $0x18] sm:$0xff] (!%p116_p9)  ;;  %1591 = vmatprep.mubr.msk.f32.mxu0 (!%p116_p9), %vm1965_vm0, %v1966_v6  ;;  %p136_p10 = scmp.lt.s32.totalorder (!%p116_p9), %s2004_s13, 7  ;;  %v148_v8 = vld [vmem:[%s2382_s1 + $0x20] sm:$0xff] (!%p116_p9)  ;;  %v149_v9 = vld [vmem:[%s2382_s1 + $0x28] sm:$0xff] (!%p116_p9)  ;;  %vm155_vm1 = vcmask (!%p116_p9), 457728  }
   0xf   : > { %1773 = vmatprep.subr.bf16.mxu1 (!%p116_p9), %v1964_v3  ;;  %1608 = vmatprep.mubr.msk.f32.mxu1 (!%p116_p9), %vm1965_vm0, %v1966_v6  ;;  %v1768_v7 = vpack.c.bf16 (!%p116_p9), %v147_v5, %v146_v2  ;;  %v1771_v10 = vpack.c.bf16 (!%p116_p9), %v149_v9, %v148_v8  ;;  %v150_v11 = vld [vmem:[%s2382_s1 + $0x30] sm:$0xff] (!%p116_p9)  ;;  %v151_v15 = vld [vmem:[%s2382_s1 + $0x38] sm:$0xff] (!%p116_p9)  ;;  %vm245_vm2 = vcmask (!%p116_p9), 261120   ;;  %v152_v19 = vld [vmem:[%s2382_s1 + $0x40] sm:$0xff] (!%p116_p9)  ;;  %vm252_vm3 = vcmask (!%p116_p9), 253952   ;;  %s134_s28 = sand.u32 (!%p116_p9), 1, %s1954_s10  }
  0x10   : > { %1766 = vmatpush3.bf16.msra.mxu0 (!%p116_p9), %v1765_v4  ;;  %v153_v24 = vld [vmem:[%s2382_s1 + $0x48] sm:$0x1] (!%p116_p9)  ;;  %v301_v45 = vld [vmem:[%s2382_s1 + $0x58] sm:$0xff] (!%p116_p9)  ;;  %v302_v46 = vld [vmem:[%s2382_s1 + $0x60] sm:$0xff] (!%p116_p9)  ;;  %v2120_v63 = vshrl.u32 (!%p116_p9), %v287_v59, 7  ;;  %vm791_vm6 = vcmask (!%p116_p9), 1040384  }
  0x11   : > { %1767 = vmatprep.subr.bf16.mxu0 (!%p116_p9), %v1964_v3  ;;  %v309_v47 = vld [vmem:[%s2382_s1 + $0x98] sm:$0xff] (!%p116_p9)  ;;  %v1774_v48 = vpack.c.bf16 (!%p116_p9), %v302_v46, %v301_v45  ;;  %v310_v49 = vld [vmem:[%s2382_s1 + $0xa0] sm:$0xff] (!%p116_p9)  ;;  %v303_v50 = vld [vmem:[%s2382_s1 + $0x68] sm:$0xff] (!%p116_p9)  ;;  %vm781_vm7 = vcmask (!%p116_p9), 138240   ;;  %vm1205_vm9 = vcmask (!%p116_p9), 523264   ;;  %s135_s30 = scalar_lea.vmem (!%p116_p9), [#allocation2], %s134_s28 }
  0x12   : > { %v304_v51 = vld [vmem:[%s2382_s1 + $0x70] sm:$0xff] (!%p116_p9)  ;;  %v1786_v52 = vpack.c.bf16 (!%p116_p9), %v310_v49, %v309_v47  ;;  %v311_v53 = vld [vmem:[%s2382_s1 + $0xa8] sm:$0xff] (!%p116_p9)  ;;  %v289_v4 = vsub.s32 (!%p116_p9), 0, %v2120_v63  ;;  %v296_v8 = vsub.s32 (!%p116_p9), 1, %v2120_v63  ;;  %vm1793_vm5 = vmpackc.low (!%p116_p9), %vm245_vm2, %vm245_vm2  ;;  %s1397_s3 = sshll.u32 (!%p116_p9), %s135_s30, 4  ;;  %s1385_s7 = scalar_lea.sflag (!%p116_p9), [#allocation3], %s134_s28  ;;  %s2341_s3 = int_to_ptr.vmem [resolvable:$true] %s1397_s3 }
  0x13   : > { %v312_v54 = vld [vmem:[%s2382_s1 + $0xb0] sm:$0xff] (!%p116_p9)  ;;  %1775 = vmatpush3.bf16.msra.mxu1 (!%p116_p9), %v1774_v48  ;;  %v1777_v55 = vpack.c.bf16 (!%p116_p9), %v304_v51, %v303_v50  ;;  %s1900_s8 = scalar_lea.vmem (!%p116_p9), %s2341_s3, 16 }
  0x14   : > { %1769 = vmatpush3.bf16.msra.mxu0 (!%p116_p9), %v1768_v7  ;;  %1776 = vmatprep.subr.bf16.mxu1 (!%p116_p9), %v1964_v3  ;;  %v1789_v56 = vpack.c.bf16 (!%p116_p9), %v312_v54, %v311_v53  ;;  %v2126_v7 = vld [vmem:[%s2382_s1 + $0x50] sm:$0xff] (!%p116_p9)  ;;  %p1901_p11 = scmp.ne.s32.totalorder (!%p116_p9), %s2341_s3, %s1900_s8 }
  0x15   : > { %s137_s29 = scalar_select %p136_p10, %s2004_s13, 7  ;;  %1770 = vmatprep.subr.bf16.mxu0 %v1964_v3  ;;  %v290_v9 = vrot.slane %v2126_v7, %v289_v4 }
  0x16   : > { %p1902_p12 = pnand %p1901_p11, %p2021_p5 }
  0x17   : > { %s1829_s6 = smul.u32 24, %s137_s29  ;;  %1778 = vmatpush3.bf16.msra.mxu1 %v1777_v55  ;;  %s1496_s29 = sshll.u32 %s2004_s13, 4 }
  0x18   : > { %1772 = vmatpush3.bf16.msra.mxu0 %v1771_v10  ;;  %1779 = vmatprep.subr.bf16.mxu1 %v1964_v3  ;;  %p1903_p13 = pneg %p1902_p12  ;;  %s1967_s13 = smov [#allocation2]  }
  0x19   : > { %s140_s14 = scalar_lea.vmem %s2381_s0, %s1829_s6  ;;  %1589 = vmatprep.subr.mxu0 %v1966_v6  ;;  %s2339_s6 = scalar_lea.hbm %s2383_s2, %s1496_s29 }
  0x1a   : > { %v141_v12 = vld [vmem:[%s140_s14] sm:$0xff]  ;;  %v142_v13 = vld [vmem:[%s140_s14 + $0x8] sm:$0xff]  ;;  %v143_v14 = vld [vmem:[%s140_s14 + $0x10] sm:$0x1]  ;;  %s1904_s14 = sshll.u32 %s1967_s13, 4  ;;  %s1905_s14 = int_to_ptr.vmem [resolvable:$false] %s1904_s14 }
  0x1b   : > { %s1906_s16 = scalar_lea.vmem %s1905_s14, 32  ;;  %p1907_p0 = scmp.lt.s32.totalorder %s2341_s3, %s1905_s14 }
  0x1c   : > { %1590 = vmatpush3.msra.mxu0 %v150_v11  ;;  %p1908_p1 = scmp.lt.s32.totalorder %s1906_s16, %s1900_s8 }
  0x1d   : > { %1592 = vmatmul.mubr.msk.f32.vlgmr.msra.gmra.mrb[0].mxu0 %vm155_vm1, %v141_v12  ;;  %1785 = vmatprep.subr.bf16.mxu0 %v1964_v3  ;;  %v297_v12 = vrot.slane %v2126_v7, %v296_v8 }
  0x1e   : > { %1594 = vmatprep.mubr.msk.f32.mxu0 %vm1965_vm0, %v1966_v6  ;;  %1787 = vmatpush3.bf16.msra.mxu0 %v1786_v52  ;;  %p1909_p2 = por %p1908_p1, %p1907_p0 }
  0x1f   : > { %1788 = vmatprep.subr.bf16.mxu0 %v1964_v3 }
  0x20   : > { %p1910_p3 = pnand %p1909_p2, %p1903_p13 }
  0x21   : > { %1595 = vmatmul.mubr.msk.f32.gmra.mrb[2].mxu0 %vm155_vm1, %v142_v13  ;;  %v305_v13 = vld [vmem:[%s2382_s1 + $0x78] sm:$0xff] }
  0x22   : > { %1597 = vmatprep.mubr.msk.f32.mxu0 %vm1965_vm0, %v1966_v6  ;;  %1790 = vmatpush3.bf16.msra.mxu0 %v1789_v56 }
  0x23   : > { %1795 = vmatprep.subr.bf16.mxu0 %v1964_v3 }
  0x25   : > { %1598 = vmatmul.mubr.msk.f32.gmra.mrb[4].mxu0 %vm155_vm1, %v143_v14  ;;  %v306_v14 = vld [vmem:[%s2382_s1 + $0x80] sm:$0xff] }
  0x26   : > { %1642 = vmatprep.mubr.msk.f32.mxu0 %vm1965_vm0, %v1966_v6 }
  0xf0   : > { %v231_v16 = vpop.f32.mrb[0].mxu0 }
  0xf1   : > { %v232_v17 = vadd.f32 %v231_v16, %v151_v15  ;;  %v1593_v18 = vpop.f32.mrb[1].mxu0 }
  0xf3   : > { %v246_v20 = vsel %vm245_vm2, %v232_v17, 0.0 }
  0xf4   : > { %247 = vadd.xlane.f32.xlu0 %v246_v20  ;;  %v236_v21 = vpop.f32.mrb[2].mxu0  ;;  %v307_v20 = vld [vmem:[%s2382_s1 + $0x88] sm:$0xff] }
  0xf5   : > { %v237_v22 = vadd.f32 %v236_v21, %v152_v19  ;;  %v1596_v23 = vpop.f32.mrb[3].mxu0  ;;  %v308_v21 = vld [vmem:[%s2382_s1 + $0x90] sm:$0xff] }
  0xf7   : > { %v249_v25 = vsel %vm245_vm2, %v237_v22, 0.0 }
  0xf8   : > { %250 = vadd.xlane.f32.xlu0 %v249_v25  ;;  %v241_v26 = vpop.f32.mrb[4].mxu0 }
  0xf9   : > { %v242_v27 = vadd.f32 %v241_v26, %v153_v24  ;;  %v1599_v28 = vpop.f32.mrb[5].mxu0  ;;  %v1783_v26 = vpack.c.bf16 %v308_v21, %v307_v20 }
  0xfb   : > { %v253_v29 = vsel %vm252_vm3, %v242_v27, 0.0 }
  0xfc   : > { %254 = vadd.xlane.f32.xlu1 %v253_v29  ;;  %v2188_v29 = vand.u32 127, %v287_v59 }
  0xfe   : > { %vm564_vm4 = vcmp.lt.s32.totalorder %v2188_v29, 16  ;;  %vm1370_vm12 = vcmp.lt.s32.totalorder %v2188_v29, 10 }
 0x181   : > { %v248_v30 = vpop.xlane.xlu0 %247 }
 0x182   : > { %v257_v31 = vmul.f32 0.03125, %v248_v30  ;;  %v565_v30 = vsel %vm564_vm4, 1.0, %v1966_v6 }
 0x184   : > { %v260_v32 = vsub.f32 %v232_v17, %v257_v31  ;;  %v1780_v17 = vpack.c.bf16 %v306_v14, %v305_v13 }
 0x185   : > { %v251_v33 = vpop.xlane.xlu0 %250 }
 0x186   : > { %v258_v34 = vmul.f32 0.03125, %v251_v33  ;;  %v263_v35 = vmul.f32 %v260_v32, %v260_v32  ;;  %v566_v33 = vsub.f32 1.0, %v565_v30 }
 0x188   : > { %v261_v36 = vsub.f32 %v237_v22, %v258_v34  ;;  %v266_v37 = vsel %vm245_vm2, %v263_v35, 0.0 }
 0x189   : > { %267 = vadd.xlane.f32.xlu1 %v266_v37  ;;  %v255_v38 = vpop.xlane.xlu1 %254 }
 0x18a   : > { %v259_v39 = vmul.f32 0.03125, %v255_v38  ;;  %v264_v40 = vmul.f32 %v261_v36, %v261_v36 }
 0x18c   : > { %v2086_v41 = vsub.f32 %v242_v27, %v259_v39  ;;  %v269_v42 = vsel %vm245_vm2, %v264_v40, 0.0 }
 0x18d   : > { %270 = vadd.xlane.f32.xlu0 %v269_v42 }
 0x18e   : > { %v265_v43 = vmul.f32 %v2086_v41, %v2086_v41 }
 0x190   : > { %v272_v44 = vsel %vm252_vm3, %v265_v43, 0.0 }
 0x191   : > { %273 = vadd.xlane.f32.xlu1 %v272_v44 }
 0x216   : > { %v268_v57 = vpop.xlane.xlu1 %267 }
 0x217   : > { %v275_v58 = vmul.f32 0.03125, %v268_v57 }
 0x219   : > { %v278_v60 = vadd.f32 1e-05, %v275_v58 }
 0x21a   : > { %v271_v61 = vpop.xlane.xlu0 %270 }
 0x21b   : > { %1872 = vrsqrt.f32 %v278_v60  ;;  %v276_v62 = vmul.f32 0.03125, %v271_v61 }
 0x21d   : > { %v279_v0 = vadd.f32 1e-05, %v276_v62 }
 0x21e   : > { %v274_v1 = vpop.xlane.xlu1 %273 }
 0x21f   : > { %1874 = vrsqrt.f32 %v279_v0  ;;  %v277_v2 = vmul.f32 0.03125, %v274_v1 }
 0x221   : > { %v280_v5 = vadd.f32 1e-05, %v277_v2 }
 0x223   : > { %1876 = vrsqrt.f32 %v280_v5 }
 0x225   : > { %v1873_v10 = vpop.eup %1872 }
 0x226   : > { %v284_v11 = vmul.f32 %v1873_v10, %v260_v32 }
 0x228   : > { %v291_v15 = vmul.f32 %v290_v9, %v284_v11 }
 0x229   : > { %v1875_v16 = vpop.eup %1874 }
 0x22a   : > { %v2137_v18 = vadd.f32 %v297_v12, %v291_v15  ;;  %v285_v19 = vmul.f32 %v1875_v16, %v261_v36 }
 0x22c   : > { %1609 = vmatmul.mubr.msk.f32.vlgmr.msra.gmra.mrb[0].mxu1 %vm245_vm2, %v2137_v18  ;;  %1643 = vmatmul.mubr.msk.f32.vlgmr.msra.gmra.mrb[6].mxu0 %vm245_vm2, %v2137_v18  ;;  %v292_v22 = vmul.f32 %v290_v9, %v285_v19 }
 0x22d   : > { %v1877_v23 = vpop.eup %1876  ;;  %1611 = vmatprep.mubr.msk.f32.mxu1 %vm1965_vm0, %v1966_v6  ;;  %1781 = vmatpush3.bf16.msra.mxu1 %v1780_v17 }
 0x22e   : > { %1645 = vmatprep.mubr.msk.f32.mxu0 %vm1965_vm0, %v1966_v6  ;;  %v2153_v24 = vadd.f32 %v297_v12, %v292_v22  ;;  %v286_v25 = vmul.f32 %v1877_v23, %v2086_v41  ;;  %1782 = vmatprep.subr.bf16.mxu1 %v1964_v3 }
 0x230   : > { %1612 = vmatmul.mubr.msk.f32.gmra.mrb[2].mxu1 %vm245_vm2, %v2153_v24  ;;  %1646 = vmatmul.mubr.msk.f32.gmra.mrb[8].mxu0 %vm245_vm2, %v2153_v24  ;;  %v293_v27 = vmul.f32 %v290_v9, %v286_v25 }
 0x231   : > { %1614 = vmatprep.mubr.msk.f32.mxu1 %vm1965_vm0, %v1966_v6  ;;  %1648 = vmatprep.mubr.msk.f32.mxu0 %vm1965_vm0, %v1966_v6 }
 0x232   : > { %v2165_v28 = vadd.f32 %v297_v12, %v293_v27  ;;  %1784 = vmatpush3.bf16.msra.mxu1 %v1783_v26 }
 0x233   : > { %1791 = vmatprep.subr.bf16.mxu1 %v1964_v3 }
 0x234   : > { %1615 = vmatmul.mubr.msk.f32.gmra.mrb[4].mxu1 %vm245_vm2, %v2165_v28  ;;  %1649 = vmatmul.mubr.msk.f32.gmra.mrb[10].mxu0 %vm245_vm2, %v2165_v28 }
 0x235   : > { %1625 = vmatprep.mubr.msk.f32.mxu1 %vm1965_vm0, %v1966_v6  ;;  %1672 = vmatprep.mubr.msk.f32.mxu0 %vm1965_vm0, %v1966_v6 }
 0x238   : > { %1626 = vmatmul.mubr.msk.f32.vlgmr.msra.gmra.mrb[6].mxu1 %vm245_vm2, %v2137_v18 }
 0x239   : > { %1628 = vmatprep.mubr.msk.f32.mxu1 %vm1965_vm0, %v1966_v6 }
 0x23c   : > { %1629 = vmatmul.mubr.msk.f32.gmra.mrb[8].mxu1 %vm245_vm2, %v2153_v24 }
 0x23d   : > { %1631 = vmatprep.mubr.msk.f32.mxu1 %vm1965_vm0, %v1966_v6 }
 0x240   : > { %1632 = vmatmul.mubr.msk.f32.gmra.mrb[10].mxu1 %vm245_vm2, %v2165_v28 }
 0x241   : > { %1657 = vmatprep.mubr.msk.f32.mxu1 %vm1965_vm0, %v1966_v6 }
 0x2ff   : > { %v388_v31 = vpop.f32.mrb[0].mxu1  ;;  %v548_v32 = vpop.f32.mrb[6].mxu0 }
 0x300   : > { %v1610_v34 = vpop.f32.mrb[1].mxu1  ;;  %v1644_v35 = vpop.f32.mrb[7].mxu0  ;;  %v573_v38 = vmul.f32 %v565_v30, %v548_v32  ;;  %v582_v39 = vmul.f32 %v566_v33, %v548_v32  ;;  %v567_v1 = vmul.f32 %v565_v30, %v388_v31  ;;  %v576_v2 = vmul.f32 %v566_v33, %v388_v31 }
 0x303   : > { %v393_v36 = vpop.f32.mrb[2].mxu1  ;;  %v553_v37 = vpop.f32.mrb[8].mxu0 }
 0x304   : > { %v574_v40 = vmul.f32 %v565_v30, %v553_v37  ;;  %v583_v41 = vmul.f32 %v566_v33, %v553_v37  ;;  %v1613_v42 = vpop.f32.mrb[3].mxu1  ;;  %v1647_v43 = vpop.f32.mrb[9].mxu0  ;;  %v568_v4 = vmul.f32 %v565_v30, %v393_v36  ;;  %v577_v5 = vmul.f32 %v566_v33, %v393_v36 }
 0x306   : > { %v1800_v44 = vpack.c.bf16 %v583_v41, %v582_v39  ;;  %v1803_v45 = vpack.c.bf16 %v574_v40, %v573_v38 }
 0x307   : > { %v398_v46 = vpop.f32.mrb[4].mxu1  ;;  %v558_v47 = vpop.f32.mrb[10].mxu0 }
 0x308   : > { %v1616_v48 = vpop.f32.mrb[5].mxu1  ;;  %v1650_v49 = vpop.f32.mrb[11].mxu0  ;;  %v575_v8 = vmul.f32 %v565_v30, %v558_v47  ;;  %v584_v9 = vmul.f32 %v566_v33, %v558_v47  ;;  %v569_v10 = vmul.f32 %v565_v30, %v398_v46  ;;  %v578_v11 = vmul.f32 %v566_v33, %v398_v46 }
 0x30b   : > { %v468_v50 = vpop.f32.mrb[6].mxu1 }
 0x30c   : > { %v1627_v51 = vpop.f32.mrb[7].mxu1  ;;  %v570_v53 = vmul.f32 %v565_v30, %v468_v50  ;;  %v579_v54 = vmul.f32 %v566_v33, %v468_v50 }
 0x30f   : > { %v473_v52 = vpop.f32.mrb[8].mxu1 }
 0x310   : > { %v571_v55 = vmul.f32 %v565_v30, %v473_v52  ;;  %v580_v56 = vmul.f32 %v566_v33, %v473_v52  ;;  %v1630_v57 = vpop.f32.mrb[9].mxu1 }
 0x311   : > { %v1023_v57 = vld [vmem:[%s2382_s1 + $0xb8] sm:$0xff] }
 0x312   : > { %v1792_v58 = vpack.c.bf16 %v571_v55, %v570_v53  ;;  %v1796_v59 = vpack.c.bf16 %v580_v56, %v579_v54 }
 0x313   : > { %v478_v60 = vpop.f32.mrb[10].mxu1 }
 0x314   : > { %v1633_v61 = vpop.f32.mrb[11].mxu1  ;;  %1794 = vmatpush3.bf16.xpose.msk.msra.mxu1 %vm1793_vm5, %v1792_v58  ;;  %1798 = vmatpush3.bf16.xpose.msk.msra.mxu0 %vm1793_vm5, %v1796_v59  ;;  %v572_v62 = vmul.f32 %v565_v30, %v478_v60  ;;  %v581_v0 = vmul.f32 %v566_v33, %v478_v60  ;;  %v1024_v58 = vld [vmem:[%s2382_s1 + $0xc0] sm:$0xff]  ;;  %v1026_v60 = vld [vmem:[%s2382_s1 + $0xd0] sm:$0xff] }
 0x315   : > { %1655 = vmatprep.subr.mxu1 %v1966_v6  ;;  %1670 = vmatprep.subr.mxu0 %v1966_v6  ;;  %v1806_v59 = vpack.c.bf16 %v1024_v58, %v1023_v57 }
 0x31c   : > { %1656 = vmatpush3.xpose.msk.msra.mxu1 %vm245_vm2, %v572_v62  ;;  %1671 = vmatpush3.xpose.msk.msra.mxu0 %vm245_vm2, %v581_v0 }
 0x31d   : > { %1799 = vmatprep.subr.bf16.mxu1 %v1964_v3  ;;  %1802 = vmatprep.subr.bf16.mxu0 %v1964_v3 }
 0x31f   : > { %1658 = vmatmul.mubr.msk.f32.vlgmr.msra.gmra.mrb[12].mxu1 %vm245_vm2, %v567_v1  ;;  %1673 = vmatmul.mubr.msk.f32.vlgmr.msra.gmra.mrb[12].mxu0 %vm245_vm2, %v576_v2 }
 0x320   : > { %1801 = vmatpush3.bf16.msra.mxu1 %v1800_v44  ;;  %1804 = vmatpush3.bf16.msra.mxu0 %v1803_v45 }
 0x321   : > { %1660 = vmatprep.mubr.msk.f32.mxu1 %vm1965_vm0, %v1966_v6  ;;  %1675 = vmatprep.mubr.msk.f32.mxu0 %vm1965_vm0, %v1966_v6 }
 0x322   : > { %1685 = vmatprep.subr.mxu1 %v1966_v6  ;;  %1700 = vmatprep.subr.mxu0 %v1966_v6 }
 0x323   : > { %1661 = vmatmul.mubr.msk.f32.gmra.mrb[14].mxu1 %vm245_vm2, %v568_v4  ;;  %1676 = vmatmul.mubr.msk.f32.gmra.mrb[14].mxu0 %vm245_vm2, %v577_v5 }
 0x324   : > { %1686 = vmatpush3.msk.msra.mxu1 %vm791_vm6, %v584_v9  ;;  %1701 = vmatpush3.msk.msra.mxu0 %vm791_vm6, %v575_v8 }
 0x325   : > { %1663 = vmatprep.mubr.msk.f32.mxu1 %vm1965_vm0, %v1966_v6  ;;  %1678 = vmatprep.mubr.msk.f32.mxu0 %vm1965_vm0, %v1966_v6 }
 0x326   : > { %1805 = vmatprep.subr.bf16.mxu1 %v1964_v3  ;;  %1811 = vmatprep.subr.bf16.mxu0 %v1964_v3 }
 0x327   : > { %1664 = vmatmul.mubr.msk.f32.gmra.mrb[16].mxu1 %vm245_vm2, %v569_v10  ;;  %1679 = vmatmul.mubr.msk.f32.gmra.mrb[16].mxu0 %vm245_vm2, %v578_v11 }
 0x328   : > { %1687 = vmatprep.mubr.msk.f32.mxu1 %vm1965_vm0, %v1966_v6  ;;  %1702 = vmatprep.mubr.msk.f32.mxu0 %vm1965_vm0, %v1966_v6 }
 0x3f2   : > { %v669_v12 = vpop.f32.mrb[12].mxu1  ;;  %v767_v13 = vpop.f32.mrb[12].mxu0 }
 0x3f3   : > { %v1659_v14 = vpop.f32.mrb[13].mxu1  ;;  %v1674_v15 = vpop.f32.mrb[13].mxu0  ;;  %1688 = vmatmul.mubr.msk.f32.vlgmr.msra.gmra.mrb[18].mxu1 %vm781_vm7, %v767_v13  ;;  %1703 = vmatmul.mubr.msk.f32.vlgmr.msra.gmra.mrb[18].mxu0 %vm781_vm7, %v669_v12  ;;  %v1011_v12 = vsub.s32 2, %v2120_v63 }
 0x3f4   : > { %1690 = vmatprep.mubr.msk.f32.mxu1 %vm1965_vm0, %v1966_v6  ;;  %1705 = vmatprep.mubr.msk.f32.mxu0 %vm1965_vm0, %v1966_v6  ;;  %v1018_v14 = vsub.s32 3, %v2120_v63  ;;  %v1027_v63 = vld [vmem:[%s2382_s1 + $0xd8] sm:$0xff] }
 0x3f5   : > { %1807 = vmatpush3.bf16.msra.mxu1 %v1806_v59  ;;  %v1012_v15 = vrot.slane %v2126_v7, %v1011_v12 }
 0x3f6   : > { %v674_v16 = vpop.f32.mrb[14].mxu1  ;;  %v772_v17 = vpop.f32.mrb[14].mxu0  ;;  %1808 = vmatprep.subr.bf16.mxu1 %v1964_v3 }
 0x3f7   : > { %v1662_v19 = vpop.f32.mrb[15].mxu1  ;;  %v1677_v20 = vpop.f32.mrb[15].mxu0  ;;  %1691 = vmatmul.mubr.msk.f32.gmra.mrb[20].mxu1 %vm781_vm7, %v772_v17  ;;  %1706 = vmatmul.mubr.msk.f32.gmra.mrb[20].mxu0 %vm781_vm7, %v674_v16  ;;  %v1019_v17 = vrot.slane %v2126_v7, %v1018_v14  ;;  %v1028_v7 = vld [vmem:[%s2382_s1 + $0xe0] sm:$0xff] }
 0x3f8   : > { %1693 = vmatprep.mubr.msk.f32.mxu1 %vm1965_vm0, %v1966_v6  ;;  %1708 = vmatprep.mubr.msk.f32.mxu0 %vm1965_vm0, %v1966_v6 }
 0x3fa   : > { %v679_v21 = vpop.f32.mrb[16].mxu1  ;;  %v777_v22 = vpop.f32.mrb[16].mxu0 }
 0x3fb   : > { %v1665_v23 = vpop.f32.mrb[17].mxu1  ;;  %v1680_v25 = vpop.f32.mrb[17].mxu0  ;;  %1694 = vmatmul.mubr.msk.f32.gmra.mrb[22].mxu1 %vm781_vm7, %v777_v22  ;;  %1709 = vmatmul.mubr.msk.f32.gmra.mrb[22].mxu0 %vm781_vm7, %v679_v21 }
 0x3fc   : > { %1719 = vmatprep.mubr.msk.f32.mxu1 %vm1965_vm0, %v1966_v6  ;;  %1744 = vmatprep.mubr.msk.f32.mxu0 %vm1965_vm0, %v1966_v6 }
 0x4c6   : > { %v861_v26 = vpop.f32.mrb[18].mxu1  ;;  %v953_v27 = vpop.f32.mrb[18].mxu0 }
 0x4c7   : > { %v954_v30 = vadd.f32 %v953_v27, %v861_v26  ;;  %v1689_v31 = vpop.f32.mrb[19].mxu1  ;;  %v1704_v32 = vpop.f32.mrb[19].mxu0  ;;  %v1812_v27 = vpack.c.bf16 %v1028_v7, %v1027_v63 }
 0x4c8   : > { %v1030_v31 = vld [vmem:[%s2382_s1 + $0xf0] sm:$0xff] }
 0x4c9   : > { %v2243_v33 = vadd.f32 %v954_v30, %v2137_v18  ;;  %1813 = vmatpush3.bf16.msra.mxu0 %v1812_v27  ;;  %v1029_v30 = vld [vmem:[%s2382_s1 + $0xe8] sm:$0xff] }
 0x4ca   : > { %v866_v34 = vpop.f32.mrb[20].mxu1  ;;  %v958_v35 = vpop.f32.mrb[20].mxu0  ;;  %1814 = vmatprep.subr.bf16.mxu0 %v1964_v3  ;;  %v1815_v32 = vpack.c.bf16 %v1030_v31, %v1029_v30 }
 0x4cb   : > { %v959_v36 = vadd.f32 %v958_v35, %v866_v34  ;;  %v1692_v37 = vpop.f32.mrb[21].mxu1  ;;  %v1707_v38 = vpop.f32.mrb[21].mxu0  ;;  %v970_v39 = vsel %vm245_vm2, %v2243_v33, 0.0  ;;  %v1031_v34 = vld [vmem:[%s2382_s1 + $0xf8] sm:$0xff]  ;;  %v1032_v35 = vld [vmem:[%s2382_s1 + $0x100] sm:$0xff] }
 0x4cc   : > { %971 = vadd.xlane.f32.xlu0 %v970_v39  ;;  %v1033_v37 = vld [vmem:[%s2382_s1 + $0x108] sm:$0xff]  ;;  %v1034_v38 = vld [vmem:[%s2382_s1 + $0x110] sm:$0xff] }
 0x4cd   : > { %v968_v40 = vadd.f32 %v959_v36, %v2153_v24  ;;  %1816 = vmatpush3.bf16.msra.mxu0 %v1815_v32  ;;  %v1818_v36 = vpack.c.bf16 %v1032_v35, %v1031_v34  ;;  %v1821_v39 = vpack.c.bf16 %v1034_v38, %v1033_v37 }
 0x4ce   : > { %v871_v41 = vpop.f32.mrb[22].mxu1  ;;  %v963_v42 = vpop.f32.mrb[22].mxu0  ;;  %1817 = vmatprep.subr.bf16.mxu0 %v1964_v3 }
 0x4cf   : > { %v964_v43 = vadd.f32 %v963_v42, %v871_v41  ;;  %v1695_v44 = vpop.f32.mrb[23].mxu1  ;;  %v1710_v45 = vpop.f32.mrb[23].mxu0  ;;  %v973_v46 = vsel %vm245_vm2, %v968_v40, 0.0 }
 0x4d0   : > { %974 = vadd.xlane.f32.xlu0 %v973_v46 }
 0x4d1   : > { %v969_v24 = vadd.f32 %v964_v43, %v2165_v28  ;;  %v1025_v28 = vld [vmem:[%s2382_s1 + $0xc8] sm:$0xff]  ;;  %1819 = vmatpush3.bf16.msra.mxu0 %v1818_v36 }
 0x4d2   : > { %v1809_v61 = vpack.c.bf16 %v1026_v60, %v1025_v28  ;;  %1820 = vmatprep.subr.bf16.mxu0 %v1964_v3 }
 0x4d3   : > { %v976_v56 = vsel %vm252_vm3, %v969_v24, 0.0 }
 0x4d4   : > { %1810 = vmatpush3.bf16.msra.mxu1 %v1809_v61 }
 0x4d5   : > { %1823 = vmatprep.subr.bf16.mxu1 %v1964_v3  ;;  %1822 = vmatpush3.bf16.msra.mxu0 %v1821_v39 }
 0x559   : > { %v972_v18 = vpop.xlane.xlu0 %971 }
 0x55a   : > { %v979_v47 = vmul.f32 0.03125, %v972_v18 }
 0x55c   : > { %v982_v48 = vsub.f32 %v2243_v33, %v979_v47 }
 0x55d   : > { %v975_v49 = vpop.xlane.xlu0 %974 }
 0x55e   : > { %v980_v50 = vmul.f32 0.03125, %v975_v49  ;;  %v985_v51 = vmul.f32 %v982_v48, %v982_v48 }
 0x560   : > { %v983_v52 = vsub.f32 %v968_v40, %v980_v50  ;;  %v988_v53 = vsel %vm245_vm2, %v985_v51, 0.0 }
 0x561   : > { %989 = vadd.xlane.f32.xlu1 %v988_v53 }
 0x562   : > { %v986_v54 = vmul.f32 %v983_v52, %v983_v52 }
 0x564   : > { %v991_v55 = vsel %vm245_vm2, %v986_v54, 0.0 }
 0x565   : > { %992 = vadd.xlane.f32.xlu0 %v991_v55  ;;  %977 = vadd.xlane.f32.xlu1 %v976_v56 }
 0x5ee   : > { %v990_v62 = vpop.xlane.xlu1 %989 }
 0x5ef   : > { %v997_v0 = vmul.f32 0.03125, %v990_v62 }
 0x5f1   : > { %v1000_v1 = vadd.f32 1e-05, %v997_v0 }
 0x5f2   : > { %v993_v2 = vpop.xlane.xlu0 %992  ;;  %v978_v4 = vpop.xlane.xlu1 %977 }
 0x5f3   : > { %1878 = vrsqrt.f32 %v1000_v1  ;;  %v998_v5 = vmul.f32 0.03125, %v993_v2  ;;  %v981_v8 = vmul.f32 0.03125, %v978_v4 }
 0x5f5   : > { %v1001_v9 = vadd.f32 1e-05, %v998_v5  ;;  %v984_v10 = vsub.f32 %v969_v24, %v981_v8 }
 0x5f7   : > { %1880 = vrsqrt.f32 %v1001_v9  ;;  %v987_v11 = vmul.f32 %v984_v10, %v984_v10 }
 0x5f9   : > { %v994_v13 = vsel %vm252_vm3, %v987_v11, 0.0 }
 0x5fa   : > { %995 = vadd.xlane.f32.xlu1 %v994_v13 }
 0x5fd   : > { %v1879_v16 = vpop.eup %1878 }
 0x5fe   : > { %v1006_v19 = vmul.f32 %v1879_v16, %v982_v48 }
 0x600   : > { %v1013_v20 = vmul.f32 %v1012_v15, %v1006_v19 }
 0x601   : > { %v1881_v21 = vpop.eup %1880 }
 0x602   : > { %v1020_v22 = vadd.f32 %v1019_v17, %v1013_v20  ;;  %v1007_v23 = vmul.f32 %v1881_v21, %v983_v52 }
 0x604   : > { %1720 = vmatmul.mubr.msk.f32.vlgmr.msra.gmra.mrb[24].mxu1 %vm245_vm2, %v1020_v22  ;;  %v1014_v25 = vmul.f32 %v1012_v15, %v1007_v23 }
 0x605   : > { %1722 = vmatprep.mubr.msk.f32.mxu1 %vm1965_vm0, %v1966_v6 }
 0x606   : > { %v1021_v26 = vadd.f32 %v1019_v17, %v1014_v25 }
 0x608   : > { %1723 = vmatmul.mubr.msk.f32.gmra.mrb[26].mxu1 %vm245_vm2, %v1021_v26 }
 0x609   : > { %1725 = vmatprep.mubr.msk.f32.mxu1 %vm1965_vm0, %v1966_v6 }
 0x687   : > { %v996_v40 = vpop.xlane.xlu1 %995 }
 0x688   : > { %v999_v41 = vmul.f32 0.03125, %v996_v40 }
 0x68a   : > { %v1002_v42 = vadd.f32 1e-05, %v999_v41  ;;  %v1293_v41 = vld [vmem:[%s2382_s1 + $0x118] sm:$0xff] }
 0x68c   : > { %1882 = vrsqrt.f32 %v1002_v42  ;;  %v1294_v42 = vld [vmem:[%s2382_s1 + $0x120] sm:$0xff] }
 0x696   : > { %v1883_v43 = vpop.eup %1882 }
 0x697   : > { %v1008_v44 = vmul.f32 %v1883_v43, %v984_v10  ;;  %v1824_v43 = vpack.c.bf16 %v1294_v42, %v1293_v41 }
 0x699   : > { %v1015_v45 = vmul.f32 %v1012_v15, %v1008_v44  ;;  %1825 = vmatpush3.bf16.msra.mxu1 %v1824_v43  ;;  %v1295_v44 = vld [vmem:[%s2382_s1 + $0x128] sm:$0xff] }
 0x69a   : > { %1826 = vmatprep.subr.bf16.mxu1 %v1964_v3 }
 0x69b   : > { %v1022_v46 = vadd.f32 %v1019_v17, %v1015_v45 }
 0x69d   : > { %1726 = vmatmul.mubr.msk.f32.gmra.mrb[28].mxu1 %vm245_vm2, %v1022_v46 }
 0x69e   : > { %1761 = vmatprep.mubr.msk.f32.mxu1 %vm1965_vm0, %v1966_v6 }
 0x6d7   : > { %v1110_v18 = vpop.f32.mrb[24].mxu1 }
 0x6d8   : > { %v1127_v47 = vmul.f32 0.70710677, %v1110_v18  ;;  %v1721_v48 = vpop.f32.mrb[25].mxu1  ;;  %v1124_v32 = vmul.f32 0.5, %v1110_v18 }
 0x6da   : > { %v1130_v49 = vand.u32 2147483647, %v1127_v47  ;;  %vm1190_vm8 = vcmp.ge.f32.partialorder %v1127_v47, 0.0 }
 0x6db   : > { %v1115_v50 = vpop.f32.mrb[26].mxu1 }
 0x6dc   : > { %v1133_v51 = vmul.f32 0.3275911, %v1130_v49  ;;  %v1128_v52 = vmul.f32 0.70710677, %v1115_v50  ;;  %v1724_v53 = vpop.f32.mrb[27].mxu1  ;;  %v1172_v57 = vsub.f32 0.0, %v1130_v49 }
 0x6dd   : > { %v1125_v38 = vmul.f32 0.5, %v1115_v50 }
 0x6de   : > { %v1136_v24 = vadd.f32 1.0, %v1133_v51  ;;  %v1131_v54 = vand.u32 2147483647, %v1128_v52  ;;  %v1175_v59 = vmul.f32 %v1172_v57, %v1130_v49  ;;  %vm1191_vm10 = vcmp.ge.f32.partialorder %v1128_v52, 0.0 }
 0x6e0   : > { %1884 = vrcp.f32 %v1136_v24  ;;  %v1134_v55 = vmul.f32 0.3275911, %v1131_v54  ;;  %v1173_v28 = vsub.f32 0.0, %v1131_v54  ;;  %v1178_v0 = vmul.f32 1.442695, %v1175_v59 }
 0x6e2   : > { %v1137_v56 = vadd.f32 1.0, %v1134_v55  ;;  %v1176_v1 = vmul.f32 %v1173_v28, %v1131_v54 }
 0x6e4   : > { %1886 = vrcp.f32 %v1137_v56  ;;  %v1180_v9 = vmul.f32 1.442695, %v1176_v1 }
 0x6e5   : > { %1888 = vpow2.f32 %v1178_v0 }
 0x6e6   : > { %1890 = vpow2.f32 %v1180_v9 }
 0x6ea   : > { %v1885_v58 = vpop.eup %1884 }
 0x6eb   : > { %v1145_v60 = vmul.f32 1.0614054, %v1885_v58 }
 0x6ed   : > { %v1148_v61 = vadd.f32 -1.4531521, %v1145_v60 }
 0x6ee   : > { %v1887_v62 = vpop.eup %1886 }
 0x6ef   : > { %v1151_v2 = vmul.f32 %v1885_v58, %v1148_v61  ;;  %v1146_v4 = vmul.f32 1.0614054, %v1887_v62  ;;  %v1889_v21 = vpop.eup %1888 }
 0x6f0   : > { %v1891_v63 = vpop.eup %1890 }
 0x6f1   : > { %v1154_v5 = vadd.f32 1.4214138, %v1151_v2  ;;  %v1149_v8 = vadd.f32 -1.4531521, %v1146_v4 }
 0x6f3   : > { %v1157_v10 = vmul.f32 %v1885_v58, %v1154_v5  ;;  %v1152_v11 = vmul.f32 %v1887_v62, %v1149_v8 }
 0x6f5   : > { %v1160_v12 = vadd.f32 -0.28449672, %v1157_v10  ;;  %v1155_v13 = vadd.f32 1.4214138, %v1152_v11 }
 0x6f7   : > { %v1163_v14 = vmul.f32 %v1885_v58, %v1160_v12  ;;  %v1158_v15 = vmul.f32 %v1887_v62, %v1155_v13 }
 0x6f9   : > { %v1166_v16 = vadd.f32 0.2548296, %v1163_v14  ;;  %v1161_v17 = vadd.f32 -0.28449672, %v1158_v15 }
 0x6fb   : > { %v1169_v19 = vmul.f32 %v1885_v58, %v1166_v16  ;;  %v1164_v20 = vmul.f32 %v1887_v62, %v1161_v17 }
 0x6fd   : > { %v1184_v22 = vmul.f32 %v1889_v21, %v1169_v19  ;;  %v1167_v23 = vadd.f32 0.2548296, %v1164_v20 }
 0x6ff   : > { %v1187_v25 = vsub.f32 1.0, %v1184_v22  ;;  %v1170_v26 = vmul.f32 %v1887_v62, %v1167_v23 }
 0x701   : > { %v1193_v7 = vsub.f32 0.0, %v1187_v25  ;;  %v1185_v27 = vmul.f32 %v1891_v63, %v1170_v26 }
 0x703   : > { %v1196_v30 = vsel %vm1190_vm8, %v1187_v25, %v1193_v7  ;;  %v1188_v31 = vsub.f32 1.0, %v1185_v27 }
 0x704   : > { %v1199_v34 = vadd.f32 1.0, %v1196_v30 }
 0x705   : > { %v1194_v35 = vsub.f32 0.0, %v1188_v31 }
 0x706   : > { %v1202_v36 = vmul.f32 %v1199_v34, %v1124_v32 }
 0x707   : > { %v1197_v37 = vsel %vm1191_vm10, %v1188_v31, %v1194_v35 }
 0x708   : > { %v1200_v39 = vadd.f32 1.0, %v1197_v37  ;;  %1745 = vmatmul.mubr.msk.f32.vlgmr.msra.gmra.mrb[24].mxu0 %vm1205_vm9, %v1202_v36 }
 0x709   : > { %1747 = vmatprep.mubr.msk.f32.mxu0 %vm1965_vm0, %v1966_v6 }
 0x70a   : > { %v1203_v40 = vmul.f32 %v1200_v39, %v1125_v38 }
 0x70c   : > { %1748 = vmatmul.mubr.msk.f32.gmra.mrb[26].mxu0 %vm1205_vm9, %v1203_v40 }
 0x70d   : > { %1750 = vmatprep.mubr.msk.f32.mxu0 %vm1965_vm0, %v1966_v6  ;;  %v1296_v6 = vld [vmem:[%s2382_s1 + $0x130] sm:$0xff] }
 0x70e   : > { %v1827_v45 = vpack.c.bf16 %v1296_v6, %v1295_v44 }
 0x710   : > { %1828 = vmatpush3.bf16.msra.mxu1 %v1827_v45 }
 0x770   : > { %v1120_v46 = vpop.f32.mrb[28].mxu1 }
 0x771   : > { %v1129_v18 = vmul.f32 0.70710677, %v1120_v46  ;;  %v1727_v47 = vpop.f32.mrb[29].mxu1  ;;  %v1126_v4 = vmul.f32 0.5, %v1120_v46 }
 0x773   : > { %v1132_v48 = vand.u32 2147483647, %v1129_v18  ;;  %vm1192_vm11 = vcmp.ge.f32.partialorder %v1129_v18, 0.0 }
 0x775   : > { %v1135_v49 = vmul.f32 0.3275911, %v1132_v48  ;;  %v1174_v51 = vsub.f32 0.0, %v1132_v48 }
 0x777   : > { %v1138_v50 = vadd.f32 1.0, %v1135_v49  ;;  %v1177_v3 = vmul.f32 %v1174_v51, %v1132_v48 }
 0x779   : > { %1892 = vrcp.f32 %v1138_v50  ;;  %v1182_v54 = vmul.f32 1.442695, %v1177_v3 }
 0x77b   : > { %1894 = vpow2.f32 %v1182_v54 }
 0x783   : > { %v1893_v52 = vpop.eup %1892 }
 0x784   : > { %v1147_v53 = vmul.f32 1.0614054, %v1893_v52 }
 0x785   : > { %v1895_v61 = vpop.eup %1894 }
 0x786   : > { %v1150_v24 = vadd.f32 -1.4531521, %v1147_v53 }
 0x788   : > { %v1153_v55 = vmul.f32 %v1893_v52, %v1150_v24 }
 0x78a   : > { %v1156_v56 = vadd.f32 1.4214138, %v1153_v55 }
 0x78c   : > { %v1159_v57 = vmul.f32 %v1893_v52, %v1156_v56 }
 0x78e   : > { %v1162_v58 = vadd.f32 -0.28449672, %v1159_v57 }
 0x790   : > { %v1165_v59 = vmul.f32 %v1893_v52, %v1162_v58 }
 0x792   : > { %v1168_v28 = vadd.f32 0.2548296, %v1165_v59 }
 0x794   : > { %v1171_v60 = vmul.f32 %v1893_v52, %v1168_v28 }
 0x796   : > { %v1186_v62 = vmul.f32 %v1895_v61, %v1171_v60 }
 0x798   : > { %v1189_v0 = vsub.f32 1.0, %v1186_v62 }
 0x79a   : > { %v1195_v1 = vsub.f32 0.0, %v1189_v0 }
 0x79c   : > { %v1198_v2 = vsel %vm1192_vm11, %v1189_v0, %v1195_v1 }
 0x79d   : > { %v1201_v5 = vadd.f32 1.0, %v1198_v2 }
 0x79f   : > { %v1204_v8 = vmul.f32 %v1201_v5, %v1126_v4 }
 0x7a1   : > { %1751 = vmatmul.mubr.msk.f32.gmra.mrb[28].mxu0 %vm1205_vm9, %v1204_v8 }
 0x7db   : > { %v1281_v9 = vpop.f32.mrb[24].mxu0 }
 0x7dc   : > { %v1282_v10 = vadd.f32 %v1281_v9, %v2243_v33  ;;  %v1746_v11 = vpop.f32.mrb[25].mxu0 }
 0x7de   : > { %1762 = vmatmul.mubr.msk.f32.vlgmr.msra.gmra.mrb[30].mxu1 %vm245_vm2, %v1282_v10 }
 0x7df   : > { %v1286_v12 = vpop.f32.mrb[26].mxu0 }
 0x7e0   : > { %v1749_v13 = vpop.f32.mrb[27].mxu0 }
 0x874   : > { %v1290_v14 = vpop.f32.mrb[28].mxu0 }
 0x875   : > { %v1752_v15 = vpop.f32.mrb[29].mxu0 }
 0x8b1   : > { %v1366_v16 = vpop.f32.mrb[30].mxu1 }
 0x8b2   : > { %v1371_v17 = vsel %vm1370_vm12, %v1366_v16, -1e+30  ;;  %v1763_v19 = vpop.f32.mrb[31].mxu1 }
 0x8b3   : > { %v1372_v20 = vsel %vm791_vm6, %v1371_v17, -inf }
 0x8b4   : > { %1373 = vmax.xlane.f32.xlu0 %v1372_v20 }
 0x941   : > { %v1374_v21 = vpop.xlane.xlu0 %1373 }
 0x942   : > { %v1375_v22 = vsub.f32 %v1371_v17, %v1374_v21 }
 0x944   : > { %v1376_v33 = vmul.f32 1.442695, %v1375_v22 }
 0x946   : > { %1896 = vpow2.f32 %v1376_v33 }
 0x950   : > { %v1897_v23 = vpop.eup %1896 }
 0x951   : > { %v1378_v25 = vsel %vm791_vm6, %v1897_v23, 0.0 }
 0x952   : > { %1379 = vadd.xlane.f32.xlu1 %v1378_v25 }
 0x9df   : > { %v1380_v26 = vpop.xlane.xlu1 %1379 }
 0x9e0   : > { %1898 = vrcp.f32 %v1380_v26 }
 0x9ea   : > { %v1899_v29 = vpop.eup %1898 }
 0x9eb   : > { %v1382_v63 = vmul.f32 %v1899_v29, %v1897_v23 }
 0x9ed   : > { %1383 = vst [vmem:[%s135_s30] sm:$0x1] %v1382_v63 }
 0x9ee   : > { %1913 = shalt.err (!%p1910_p3)
}
 0x9ef   : > { %s1914_s17 = scalar_lea.hbm %s2339_s6, 16  ;;  %s1918_s23 = scalar_lea.hbm %s2383_s2, 128 }
 0x9f0   : > { %p1915_p4 = scmp.ne.s32.totalorder %s2339_s6, %s1914_s17  ;;  %p1919_p9 = scmp.lt.u32.totalorder %s2339_s6, %s2383_s2 }
 0x9f1   : > { %p1920_p10 = scmp.lt.u32.totalorder %s1918_s23, %s1914_s17  ;;  %p1922_p12 = scmp.lt.u32.totalorder %s1914_s17, %s2339_s6 }
 0x9f2   : > { %p1916_p7 = pnand %p1915_p4, %p2021_p5 }
 0x9f3   : > { %p1921_p11 = por %p1920_p10, %p1919_p9 }
 0x9f4   : > { %p1917_p8 = pneg %p1916_p7 }
 0x9f5   : > { %p1923_p13 = por %p1922_p12, %p1921_p11 }
 0x9f7   : > { %p1924_p0 = pnand %p1923_p13, %p1917_p8 }
 0x9f9   : > { %1927 = shalt.err (!%p1924_p0)
}
 0x9fa   : > { %1830 = dma.vmem_to_hbm [thread:$0]  (%p2021_p5), %s2341_s3, 16, %s2339_s6, %s1385_s7  }
 0x9fb PF: > { %p1836_p1 = scmp.ge.s32.totalorder %s1962_s12, 2  ;;  %s1409_s26 = sand.u32 1, %s1950_s9  }
 0x9fc   : > { %s1410_s27 = scalar_lea.sflag [#allocation3], %s1409_s26 }
 0x9fd   : > { %p1833_p2 = pnand %p1836_p1, %p2025_p6 }
 0x9ff   : > { %1945 = dma.done.wait (!%p1833_p2), %s1410_s27, 16  }
 0xa00   : > { %1947 = vsyncadd (!%p1833_p2), %s1410_s27, 4294967280  ;;  %p12_p3 = scmp.ge.s32.totalorder %s2008_s15, 10   ;;  %s2386_s9 = smov %s1954_s10 }
 0xa01   : > { %s2387_s10 = smov %s1958_s11  ;;  %s2388_s11 = smov %s2019_s18 }
 0xa02   : > { %s2389_s12 = smov %s2008_s15  ;;  %14 = sbr.rel (!%p12_p3) target bundleno = 3 (0x3), region = 63 }
 0xa09   :  { %1414 = vsyncpa [#allocation3], 1 }
 0xa0a   :  { %1416 = vsyncpa [#allocation3 + $0x1], 1 }

</bundles_post_ra>
